<compile_context>
chip_gen: v5e
topology: v5e:2x2
jax: 0.10.0
libtpu: 0.0.40
codegen_flags: <defaults>
</compile_context>

<pallas_src>
import jax
import jax.numpy as jnp
from jax import lax
from jax.experimental import pallas as pl
from jax.experimental.pallas import tpu as pltpu

HIDDEN = 128


def _round_up(n, m):
    return ((n + m - 1) // m) * m


def _qnet_kernel(x_ref, w1_ref, b1_ref, w2_ref, b2_ref, w3_ref, b3_ref, out_ref):
    mxu = w1_ref.dtype  # MXU input dtype (f32 default, bf16 optional)

    # Layer 1: Linear(obs_dim -> 128) + ReLU.  f32 accumulate, f32 elementwise.
    h = jnp.dot(x_ref[...].astype(mxu), w1_ref[...],
                preferred_element_type=jnp.float32)
    h = jnp.maximum(h + b1_ref[...], 0.0)

    # Layer 2: Linear(128 -> 128) + ReLU.
    h = jnp.dot(h.astype(mxu), w2_ref[...],
                preferred_element_type=jnp.float32)
    h = jnp.maximum(h + b2_ref[...], 0.0)

    # Layer 3 emitted TRANSPOSED: q_T[a, b] = sum_k w3[a, k] * h[b, k].
    # Output block is (A_pad8, tb) with the batch on the lane axis -> lane-dense,
    # unmasked vst epilogue and a contiguous HBM writeback of only the real actions.
    q_t = lax.dot_general(w3_ref[...], h.astype(mxu),
                          dimension_numbers=(((1,), (1,)), ((), ())),
                          preferred_element_type=jnp.float32)
    out_ref[...] = (q_t + b3_ref[...]).astype(out_ref.dtype)


def prepare_params(params, mxu_dtype=jnp.float32):
    """One-time conversion from PyTorch [out, in] params to kernel layout.

    * w1/w2 transposed to [in, out]; w3 kept [num_actions, HIDDEN] (transposed-output
      final layer), zero-padded to a multiple of 8 actions (sublane pad only).
    * Biases as f32 rows/columns shaped for in-kernel broadcast.
    * mxu_dtype: dtype fed to the MXU. float32 (default) gives bit-closer parity with
      the f32 PyTorch reference (free — kernel is HBM-bound); bfloat16 halves weight
      VMEM and matches bf16 activation producers.
    Call once at load time, not per forward.
    """
    num_actions = params["w3"].shape[0]
    a_pad = _round_up(num_actions, 8)  # sublane pad only (not 128)
    w3 = jnp.zeros((a_pad, HIDDEN), jnp.float32).at[:num_actions, :].set(params["w3"])
    b3 = jnp.zeros((a_pad,), jnp.float32).at[:num_actions].set(params["b3"])
    kp = {
        "w1": params["w1"].T.astype(mxu_dtype),           # [obs_dim, 128]
        "b1": params["b1"][None, :].astype(jnp.float32),  # [1, 128]
        "w2": params["w2"].T.astype(mxu_dtype),           # [128, 128]
        "b2": params["b2"][None, :].astype(jnp.float32),  # [1, 128]
        "w3": w3.astype(mxu_dtype),                       # [a_pad8, 128]  (original orientation)
        "b3": b3[:, None].astype(jnp.float32),            # [a_pad8, 1]
    }
    return kp, num_actions


def discrete_qnet_forward(x, kp, num_actions, tile_b=1024, transposed_output=False):
    """x: [B, obs_dim] (f32 or bf16); kp: prepare_params() output.

    Returns [B, num_actions] f32.  With transposed_output=True returns the kernel's
    native lane-dense [num_actions, B] q^T (skips the final XLA transpose; handy for
    argmax-over-actions consumers).
    """
    B, obs_dim = x.shape
    a_pad = kp["w3"].shape[0]

    # Batch tiling:
    #  * B <= 128: a single tile (block last dim == full array dim keeps the output
    #    store legal even below 128 lanes).
    #    TODO(synk): for B <= ~64 a plain-XLA path can beat the kernel (launch +
    #    ~0.35us/step pipeline overhead dominate <1us of real DMA+MXU work).
    #  * B  > 128: tiles are a multiple of 128 rows (lane-dense transposed output
    #    store) and we target >=4 grid steps so x/out DMAs pipeline and the
    #    "parallel" batch axis spans both TensorCores on v7x.
    if B <= 128:
        tb = _round_up(B, 8)
    else:
        tb = max(128, min(tile_b, _round_up(pl.cdiv(B, 4), 128)))
    b_pad = _round_up(B, tb)
    if b_pad != B:
        x = jnp.pad(x, ((0, b_pad - B), (0, 0)))  # pad in the caller's dtype
    grid = (b_pad // tb,)

    const = lambda a: pl.BlockSpec(a.shape, lambda i: (0,) * a.ndim)

    x_item = x.dtype.itemsize
    param_bytes = sum(int(v.size) * v.dtype.itemsize for v in kp.values())
    flops = 2 * b_pad * (obs_dim * HIDDEN + HIDDEN * HIDDEN + HIDDEN * a_pad)
    bytes_accessed = b_pad * obs_dim * x_item + a_pad * b_pad * 4 + param_bytes

    # VMEM: double-buffered x/out tiles + resident weights + f32 intermediates.
    vmem_need = (2 * tb * obs_dim * x_item + 2 * a_pad * tb * 4
                 + 2 * param_bytes + 3 * tb * HIDDEN * 4)
    vmem_limit = min(_round_up(vmem_need + (4 << 20), 1 << 20), 32 << 20)

    q_t = pl.pallas_call(
        _qnet_kernel,
        out_shape=jax.ShapeDtypeStruct((a_pad, b_pad), jnp.float32),
        grid=grid,
        in_specs=[
            pl.BlockSpec((tb, obs_dim), lambda i: (i, 0)),   # x: tiled over batch
            const(kp["w1"]), const(kp["b1"]),                # weights/biases: resident
            const(kp["w2"]), const(kp["b2"]),
            const(kp["w3"]), const(kp["b3"]),
        ],
        # Transposed output: batch on the lane axis -> lane-dense, unmasked stores.
        out_specs=pl.BlockSpec((a_pad, tb), lambda i: (0, i)),
        compiler_params=pltpu.CompilerParams(
            dimension_semantics=("parallel",),   # v7x: shard batch across both TCs
            vmem_limit_bytes=vmem_limit),
        cost_estimate=pl.CostEstimate(flops=flops, transcendentals=0,
                                      bytes_accessed=bytes_accessed),
    )(x, kp["w1"], kp["b1"], kp["w2"], kp["b2"], kp["w3"], kp["b3"])

    q_t = q_t[:num_actions, :B]
    if transposed_output:
        return q_t
    return q_t.T


def init_params(key, observation_dim, num_actions, hidden=HIDDEN):
    """Deterministic synthetic init, PyTorch nn.Linear weight convention [out, in]."""
    ks = jax.random.split(key, 6)
    scale1 = 1.0 / jnp.sqrt(observation_dim)
    scale2 = 1.0 / jnp.sqrt(hidden)
    return {
        "w1": jax.random.uniform(ks[0], (hidden, observation_dim), jnp.float32, -scale1, scale1),
        "b1": jax.random.uniform(ks[1], (hidden,), jnp.float32, -scale1, scale1),
        "w2": jax.random.uniform(ks[2], (hidden, hidden), jnp.float32, -scale2, scale2),
        "b2": jax.random.uniform(ks[3], (hidden,), jnp.float32, -scale2, scale2),
        "w3": jax.random.uniform(ks[4], (num_actions, hidden), jnp.float32, -scale2, scale2),
        "b3": jax.random.uniform(ks[5], (num_actions,), jnp.float32, -scale2, scale2),
    }


def reference_forward(x, params):
    """Pure-f32 reference with PyTorch semantics."""
    h = jnp.maximum(x @ params["w1"].T + params["b1"], 0.0)
    h = jnp.maximum(h @ params["w2"].T + params["b2"], 0.0)
    return h @ params["w3"].T + params["b3"]


if __name__ == "__main__":
    observation_dim = 32
    num_actions = 8

    key = jax.random.PRNGKey(0)
    k_x, k_p = jax.random.split(key)
    params = init_params(k_p, observation_dim, num_actions)

    kp_f32, n_act = prepare_params(params)                         # default: f32 MXU (parity)
    kp_bf16, _ = prepare_params(params, mxu_dtype=jnp.bfloat16)    # bf16 MXU path

    # Case 1: small, tile-aligned batch (single grid step).
    batch = 8
    x = jax.random.normal(k_x, (batch, observation_dim), jnp.float32)
    q = jax.block_until_ready(discrete_qnet_forward(x, kp_f32, n_act))
    q_ref = reference_forward(x, params)
    assert q.shape == (batch, num_actions)
    assert jnp.allclose(q, q_ref, atol=5e-2, rtol=5e-2), "mismatch vs f32 reference (B=8)"

    # Case 2: batch not divisible by 8 exercises the pad-and-slice path.
    batch2 = 13
    x2 = jax.random.normal(jax.random.PRNGKey(1), (batch2, observation_dim), jnp.float32)
    q2 = jax.block_until_ready(discrete_qnet_forward(x2, kp_f32, n_act))
    q2_ref = reference_forward(x2, params)
    assert q2.shape == (batch2, num_actions)
    assert jnp.allclose(q2, q2_ref, atol=5e-2, rtol=5e-2), "mismatch vs f32 reference (B=13)"

    # Case 3: multi-tile grid (B > 128 -> 2 steps of 128 rows) with bf16 MXU weights
    # and a native-bf16 activation producer (no wrapper-side cast).
    batch3 = 200
    x3 = jax.random.normal(jax.random.PRNGKey(2), (batch3, observation_dim), jnp.float32)
    q3 = jax.block_until_ready(
        discrete_qnet_forward(x3.astype(jnp.bfloat16), kp_bf16, n_act))
    q3_ref = reference_forward(x3, params)
    assert q3.shape == (batch3, num_actions)
    assert jnp.allclose(q3, q3_ref, atol=1e-1, rtol=1e-1), "mismatch vs f32 reference (B=200)"

    print("KERNEL_OK")
</pallas_src>

<mosaic_0001>
module attributes {stable_mosaic.version = 11 : i64} {
  func.func @_qnet_kernel(%arg0: i32, %arg1: memref<8x32xf32, #tpu.memory_space<vmem>>, %arg2: memref<32x128xf32, #tpu.memory_space<vmem>>, %arg3: memref<1x128xf32, #tpu.memory_space<vmem>>, %arg4: memref<128x128xf32, #tpu.memory_space<vmem>>, %arg5: memref<1x128xf32, #tpu.memory_space<vmem>>, %arg6: memref<8x128xf32, #tpu.memory_space<vmem>>, %arg7: memref<8x1xf32, #tpu.memory_space<vmem>>, %arg8: memref<8x8xf32, #tpu.memory_space<vmem>>) attributes {dimension_semantics = [#tpu.dimension_semantics<parallel>], iteration_bounds = array<i64: 1>, scalar_prefetch = 0 : i64, scratch_operands = 0 : i64, tpu.core_type = #tpu.core_type<tc>, window_params = [{transform_indices = @transform_0, window_bounds = array<i64: 8, 32>}, {pipeline_mode = #tpu.pipeline_mode<synchronous>, transform_indices = @transform_1, window_bounds = array<i64: 32, 128>}, {pipeline_mode = #tpu.pipeline_mode<synchronous>, transform_indices = @transform_2, window_bounds = array<i64: 1, 128>}, {pipeline_mode = #tpu.pipeline_mode<synchronous>, transform_indices = @transform_3, window_bounds = array<i64: 128, 128>}, {pipeline_mode = #tpu.pipeline_mode<synchronous>, transform_indices = @transform_4, window_bounds = array<i64: 1, 128>}, {pipeline_mode = #tpu.pipeline_mode<synchronous>, transform_indices = @transform_5, window_bounds = array<i64: 8, 128>}, {pipeline_mode = #tpu.pipeline_mode<synchronous>, transform_indices = @transform_6, window_bounds = array<i64: 8, 1>}, {transform_indices = @transform_7, window_bounds = array<i64: 8, 8>}]} {
    %c0 = arith.constant 0 : index
    %c0_0 = arith.constant 0 : index
    %0 = vector.load %arg1[%c0, %c0_0] : memref<8x32xf32, #tpu.memory_space<vmem>>, vector<8x32xf32>
    %c0_1 = arith.constant 0 : index
    %c0_2 = arith.constant 0 : index
    %1 = vector.load %arg2[%c0_1, %c0_2] : memref<32x128xf32, #tpu.memory_space<vmem>>, vector<32x128xf32>
    %cst = arith.constant dense<0.000000e+00> : vector<8x128xf32>
    %2 = tpu.matmul %0, %1, %cst {dimension_numbers = #tpu.dot_dimension_numbers<[1], [0], [0], [1], [0, 0, 1, 1], [], []>} : vector<8x32xf32>, vector<32x128xf32>, vector<8x128xf32> -> vector<8x128xf32>
    %c0_3 = arith.constant 0 : index
    %c0_4 = arith.constant 0 : index
    %3 = vector.load %arg3[%c0_3, %c0_4] : memref<1x128xf32, #tpu.memory_space<vmem>>, vector<1x128xf32>
    %4 = vector.broadcast %3 : vector<1x128xf32> to vector<8x128xf32>
    %5 = arith.addf %2, %4 : vector<8x128xf32>
    %cst_5 = arith.constant 0.000000e+00 : f32
    %6 = vector.broadcast %cst_5 : f32 to vector<8x128xf32>
    %7 = arith.maximumf %5, %6 : vector<8x128xf32>
    %c0_6 = arith.constant 0 : index
    %c0_7 = arith.constant 0 : index
    %8 = vector.load %arg4[%c0_6, %c0_7] : memref<128x128xf32, #tpu.memory_space<vmem>>, vector<128x128xf32>
    %cst_8 = arith.constant dense<0.000000e+00> : vector<8x128xf32>
    %9 = tpu.matmul %7, %8, %cst_8 {dimension_numbers = #tpu.dot_dimension_numbers<[1], [0], [0], [1], [0, 0, 1, 1], [], []>} : vector<8x128xf32>, vector<128x128xf32>, vector<8x128xf32> -> vector<8x128xf32>
    %c0_9 = arith.constant 0 : index
    %c0_10 = arith.constant 0 : index
    %10 = vector.load %arg5[%c0_9, %c0_10] : memref<1x128xf32, #tpu.memory_space<vmem>>, vector<1x128xf32>
    %11 = vector.broadcast %10 : vector<1x128xf32> to vector<8x128xf32>
    %12 = arith.addf %9, %11 : vector<8x128xf32>
    %cst_11 = arith.constant 0.000000e+00 : f32
    %13 = vector.broadcast %cst_11 : f32 to vector<8x128xf32>
    %14 = arith.maximumf %12, %13 : vector<8x128xf32>
    %c0_12 = arith.constant 0 : index
    %c0_13 = arith.constant 0 : index
    %15 = vector.load %arg6[%c0_12, %c0_13] : memref<8x128xf32, #tpu.memory_space<vmem>>, vector<8x128xf32>
    %cst_14 = arith.constant dense<0.000000e+00> : vector<8x8xf32>
    %16 = tpu.matmul %15, %14, %cst_14 {dimension_numbers = #tpu.dot_dimension_numbers<[1], [1], [0], [0], [0, 0, 1, 0], [], []>} : vector<8x128xf32>, vector<8x128xf32>, vector<8x8xf32> -> vector<8x8xf32>
    %c0_15 = arith.constant 0 : index
    %c0_16 = arith.constant 0 : index
    %17 = vector.load %arg7[%c0_15, %c0_16] : memref<8x1xf32, #tpu.memory_space<vmem>>, vector<8x1xf32>
    %18 = vector.broadcast %17 : vector<8x1xf32> to vector<8x8xf32>
    %19 = arith.addf %16, %18 : vector<8x8xf32>
    %c0_17 = arith.constant 0 : index
    %c0_18 = arith.constant 0 : index
    %20 = vector.load %arg8[%c0_17, %c0_18] : memref<8x8xf32, #tpu.memory_space<vmem>>, vector<8x8xf32>
    tpu.vector_store %arg8[%c0_17, %c0_18], %19 {strides = array<i32>} : memref<8x8xf32, #tpu.memory_space<vmem>>, vector<8x8xf32>,
    return
  }
  func.func @transform_0(%arg0: i32) -> (i32, i32) {
    %c0_i32 = arith.constant 0 : i32
    %c0_i32_0 = arith.constant 0 : i32
    return %arg0, %c0_i32 : i32, i32
  }
  func.func @transform_1(%arg0: i32) -> (i32, i32) {
    %c0_i32 = arith.constant 0 : i32
    %c0_i32_0 = arith.constant 0 : i32
    %c0_i32_1 = arith.constant 0 : i32
    return %c0_i32, %c0_i32_0 : i32, i32
  }
  func.func @transform_2(%arg0: i32) -> (i32, i32) {
    %c0_i32 = arith.constant 0 : i32
    %c0_i32_0 = arith.constant 0 : i32
    %c0_i32_1 = arith.constant 0 : i32
    return %c0_i32, %c0_i32_0 : i32, i32
  }
  func.func @transform_3(%arg0: i32) -> (i32, i32) {
    %c0_i32 = arith.constant 0 : i32
    %c0_i32_0 = arith.constant 0 : i32
    %c0_i32_1 = arith.constant 0 : i32
    return %c0_i32, %c0_i32_0 : i32, i32
  }
  func.func @transform_4(%arg0: i32) -> (i32, i32) {
    %c0_i32 = arith.constant 0 : i32
    %c0_i32_0 = arith.constant 0 : i32
    %c0_i32_1 = arith.constant 0 : i32
    return %c0_i32, %c0_i32_0 : i32, i32
  }
  func.func @transform_5(%arg0: i32) -> (i32, i32) {
    %c0_i32 = arith.constant 0 : i32
    %c0_i32_0 = arith.constant 0 : i32
    %c0_i32_1 = arith.constant 0 : i32
    return %c0_i32, %c0_i32_0 : i32, i32
  }
  func.func @transform_6(%arg0: i32) -> (i32, i32) {
    %c0_i32 = arith.constant 0 : i32
    %c0_i32_0 = arith.constant 0 : i32
    %c0_i32_1 = arith.constant 0 : i32
    return %c0_i32, %c0_i32_0 : i32, i32
  }
  func.func @transform_7(%arg0: i32) -> (i32, i32) {
    %c0_i32 = arith.constant 0 : i32
    %c0_i32_0 = arith.constant 0 : i32
    return %c0_i32, %arg0 : i32, i32
  }
}

</mosaic_0001>

<bundles_post_ra>
// kernel: tpu_custom_call.1
= control target key start
LH: loop header
LB: loop body
LE: loop exit
PB: predicated region body
PF: predicated region fallthrough
CT: control target
= control target key end

     0   :  { %12 = vsyncpa [#allocation3], 0  ;;  %s378_s0 = inlined_call_operand.vmem [shape: f32[8,32], index: 0, kind: input, shape index: {}]   ;;  %s379_s1 = inlined_call_operand.hbm [shape: f32[32,128], index: 1, kind: input, shape index: {}]   ;;  %s380_s2 = inlined_call_operand.vmem [shape: f32[1,128], index: 2, kind: input, shape index: {}]   ;;  %s381_s3 = inlined_call_operand.hbm [shape: f32[128,128], index: 3, kind: input, shape index: {}]   ;;  %s382_s4 = inlined_call_operand.vmem [shape: f32[1,128], index: 4, kind: input, shape index: {}]   ;;  %s383_s5 = inlined_call_operand.hbm [shape: f32[8,128], index: 5, kind: input, shape index: {}]   ;;  %s384_s6 = inlined_call_operand.vmem [shape: f32[8,1], index: 6, kind: input, shape index: {}]   ;;  %s385_s7 = inlined_call_operand.hbm [shape: f32[8,8], index: 7, kind: output, shape index: {}]  }
   0x1   :  { %13 = vsyncpa [#allocation6], 0 }
   0x2   :  { %14 = vsyncpa [#allocation4], 0  ;;  %s36_s26 = sshll.u32 %s381_s3, 4  ;;  %s307_s27 = smov [#allocation5]   ;;  %s37_s26 = int_to_ptr.hbm [resolvable:$true] %s36_s26 }
   0x3   :  { %s38_s28 = sshll.u32 %s307_s27, 4  ;;  %s21_s8 = sshll.u32 %s379_s1, 4  ;;  %s39_s28 = int_to_ptr.vmem [resolvable:$true] %s38_s28  ;;  %s22_s8 = int_to_ptr.hbm [resolvable:$true] %s21_s8 }
   0x4   :  { %s308_s9 = smov 128   ;;  %s309_s10 = smov 8  }
   0x5   :  { %44 = dma.hbm_to_vmem [thread:$0]  %s37_s26, 2048, %s39_s28, [#allocation6], %s308_s9, %s308_s9, %s309_s10  }
   0x6   :  { %s310_s11 = smov [#allocation2]   ;;  %s52_s15 = sshll.u32 %s383_s5, 4  ;;  %s53_s15 = int_to_ptr.hbm [resolvable:$true] %s52_s15 }
   0x7   :  { %s23_s12 = sshll.u32 %s310_s11, 4  ;;  %s311_s3 = smov [#allocation7]   ;;  %s24_s12 = int_to_ptr.vmem [resolvable:$true] %s23_s12 }
   0x8   :  { %29 = dma.hbm_to_vmem [thread:$0]  %s22_s8, 512, %s24_s12, [#allocation3], %s308_s9, %s308_s9, %s309_s10  }
   0x9   :  { %s54_s16 = sshll.u32 %s311_s3, 4  ;;  %s55_s16 = int_to_ptr.vmem [resolvable:$true] %s54_s16 }
   0xa   :  { %57 = dma.hbm_to_vmem [thread:$0]  %s53_s15, 128, %s55_s16, [#allocation6]  }
   0xb   :  { %301 = dma.done.wait [#allocation3], 512  }
   0xc   :  { %302 = vsyncadd [#allocation3], 4294966784 }
   0xd   :  { %303 = dma.done.wait [#allocation6], 2176  }
   0xe   :  { %304 = vsyncadd [#allocation6], 4294965120  ;;  %v76_v0 = vld [vmem:[#allocation2 + $0x18] sm:$0xff]  ;;  %v75_v1 = vld [vmem:[#allocation2 + $0x10] sm:$0xff]  ;;  %vm81_vm0 = vcmask 261120   ;;  %v312_v26 = vmov 0  }
   0xf   :  { %97 = vmatpush.msra.mxu0 %v76_v0  ;;  %v121_v2 = vld [vmem:[#allocation5 + $0x78] sm:$0xff]  ;;  %v74_v3 = vld [vmem:[#allocation2 + $0x8] sm:$0xff]  ;;  %v120_v4 = vld [vmem:[#allocation5 + $0x70] sm:$0xff]  ;;  %202 = vset.pattern.permute.xlu0 %v312_v26  ;;  %vm174_vm1 = vcmask 64512  }
  0x10   :  { %126 = vmatpush.msra.mxu1 %v121_v2  ;;  %v119_v5 = vld [vmem:[#allocation5 + $0x68] sm:$0xff]  ;;  %v73_v6 = vld [vmem:[#allocation2] sm:$0xff]  ;;  %v117_v9 = vld [vmem:[#allocation5 + $0x58] sm:$0xff] }
  0x11   :  { %98 = vmatpush.msra.mxu0 %v75_v1  ;;  %v72_v7 = vld [vmem:[%s378_s0] sm:$0xff]  ;;  %v116_v10 = vld [vmem:[#allocation5 + $0x50] sm:$0xff]  ;;  %v115_v11 = vld [vmem:[#allocation5 + $0x48] sm:$0xff] }
  0x12   :  { %127 = vmatpush.msra.mxu1 %v120_v4  ;;  %v118_v8 = vld [vmem:[#allocation5 + $0x60] sm:$0xff]  ;;  %v113_v13 = vld [vmem:[#allocation5 + $0x38] sm:$0xff]  ;;  %v112_v14 = vld [vmem:[#allocation5 + $0x30] sm:$0xff] }
  0x13   :  { %99 = vmatpush.msra.mxu0 %v74_v3  ;;  %v114_v12 = vld [vmem:[#allocation5 + $0x40] sm:$0xff]  ;;  %v111_v15 = vld [vmem:[#allocation5 + $0x28] sm:$0xff]  ;;  %v109_v17 = vld [vmem:[#allocation5 + $0x18] sm:$0xff] }
  0x14   :  { %128 = vmatpush.msra.mxu1 %v119_v5  ;;  %v110_v16 = vld [vmem:[#allocation5 + $0x20] sm:$0xff]  ;;  %v108_v18 = vld [vmem:[#allocation5 + $0x10] sm:$0xff]  ;;  %v107_v19 = vld [vmem:[#allocation5 + $0x8] sm:$0xff] }
  0x15   :  { %100 = vmatpush.msra.mxu0 %v73_v6  ;;  %v106_v20 = vld [vmem:[#allocation5] sm:$0xff] }
  0x16   :  { %194 = vmatmul.msk.f32.vlgmr.msra.gmra.mxu0 %vm81_vm0, %v72_v7  ;;  %129 = vmatpush.msra.mxu1 %v118_v8  ;;  %v203_v21 = vld [vmem:[%s380_s2] ss:$0 sm:$0xff]  ;;  %s313_s2 = smov [#allocation8]  }
  0x17   :  { %v148_v25 = vld [vmem:[%s384_s6] sm:$0xff]  ;;  %s181_s22 = sshll.u32 %s313_s2, 4  ;;  %s183_s6 = sshll.u32 %s385_s7, 4  ;;  %s182_s22 = int_to_ptr.vmem [resolvable:$true] %s181_s22  ;;  %s184_s6 = int_to_ptr.hbm [resolvable:$true] %s183_s6 }
  0x18   :  { %130 = vmatpush.msra.mxu1 %v117_v9  ;;  %151 = vperm.xlu0 %202, %v148_v25   ;;  %v204_v27 = vld [vmem:[%s382_s4] ss:$0 sm:$0xff] }
  0x19   :  { %v147_v31 = vld [vmem:[#allocation7] sm:$0xff] }
  0x1a   :  { %131 = vmatpush.msra.mxu1 %v116_v10 }
  0x1c   :  { %132 = vmatpush.msra.mxu1 %v115_v11 }
  0x1e   :  { %133 = vmatpush.msra.mxu1 %v114_v12 }
  0x20   :  { %134 = vmatpush.msra.mxu1 %v113_v13 }
  0x22   :  { %135 = vmatpush.msra.mxu1 %v112_v14 }
  0x24   :  { %136 = vmatpush.msra.mxu1 %v111_v15 }
  0x26   :  { %137 = vmatpush.msra.mxu1 %v110_v16 }
  0x28   :  { %138 = vmatpush.msra.mxu1 %v109_v17 }
  0x2a   :  { %139 = vmatpush.msra.mxu1 %v108_v18 }
  0x2c   :  { %140 = vmatpush.msra.mxu1 %v107_v19 }
  0x2e   :  { %141 = vmatpush.msra.mxu1 %v106_v20 }
  0x8a   :  { %v152_v32 = vpop.permute.xlu0 %151 }
  0x93   :  { %v102_v22 = vpop.f32.mrf.mxu0 }
  0x94   :  { %v103_v23 = vadd.f32 %v203_v21, %v102_v22 }
  0x96   :  { %v105_v24 = vmax.f32 %v103_v23, 0.0 }
  0x98   :  { %142 = vmatmul.f32.vlgmr.msra.gmra.mxu1 %v105_v24 }
 0x115   :  { %v143_v28 = vpop.f32.mrf.mxu1 }
 0x116   :  { %v144_v29 = vadd.f32 %v204_v27, %v143_v28 }
 0x118   :  { %v146_v30 = vmax.f32 %v144_v29, 0.0 }
 0x11a   :  { %169 = vmatpush.xpose.msra.mxu2 %v146_v30 }
 0x11d   :  { %170 = vmatmul.f32.vlgmr.msra.gmra.mxu2 %v147_v31 }
 0x1a0   :  { %v171_v33 = vpop.f32.mrf.mxu2 }
 0x1a1   :  { %v172_v34 = vadd.f32 %v171_v33, %v152_v32 }
 0x1a3   :  { %175 = vst.msk [vmem:[#allocation8] sm:$0xff] %vm174_vm1, %v172_v34 }
 0x1a4   :  { %186 = dma.vmem_to_hbm [thread:$0]  %s182_s22, 128, %s184_s6, [#allocation4]  }
 0x1a5   :  { %305 = dma.done.wait [#allocation4], 128  }
 0x1a6   :  { %306 = vsyncadd [#allocation4], 4294967168 }
 0x1a7   :  { %191 = vsyncpa [#allocation3], 1 }
 0x1a8   :  { %192 = vsyncpa [#allocation6], 1 }
 0x1a9   :  { %193 = vsyncpa [#allocation4], 1 }

</bundles_post_ra>
